<compile_context>
chip_gen: v7x
topology: tpu7x:2x2x1
jax: 0.10.0
libtpu: 0.0.40
codegen_flags: <defaults>
</compile_context>

<pallas_src>
import jax
import jax.numpy as jnp
from jax.experimental import pallas as pl
from jax.experimental.pallas import tpu as pltpu

_LANE = 128
_TARGET_BLOCK_BYTES = 6 * 1024 * 1024   # ~6 MiB per block
_SMALL_BYTES = 256 * 1024               # whole-array single block below this
_VMEM_HEADROOM = 4 * 1024 * 1024        # on top of 4 x block_bytes


def _h_sigmoid_kernel(x_ref, o_ref):
    x = x_ref[...]
    # relu6(x + 3) / 6
    o_ref[...] = (jnp.clip(x + 3.0, 0.0, 6.0) * (1.0 / 6.0)).astype(o_ref.dtype)


def _sublane_pack(dtype):
    itemsize = jnp.dtype(dtype).itemsize
    return max(8, 32 // itemsize)  # f32 -> 8, bf16/f16 -> 16, 1-byte -> 32


def _cdiv(a, b):
    return -(-a // b)


def _choose_block_rows(rows, cols, itemsize, pack):
    """Pick a block row count: ~_TARGET_BLOCK_BYTES per block, multiple of the
    sublane pack, and an even grid length (>=2) so v7x's 2 TCs stay balanced."""
    bytes_per_row = cols * itemsize
    max_block_rows = max(pack, (_TARGET_BLOCK_BYTES // bytes_per_row) // pack * pack)
    num_blocks = _cdiv(rows, max_block_rows)
    if num_blocks < 2:
        num_blocks = 2
    elif num_blocks % 2 == 1:
        num_blocks += 1
    block_rows = _cdiv(_cdiv(rows, num_blocks), pack) * pack
    return max(pack, min(block_rows, max_block_rows))


def _tiled_call(x2d, block_rows, cols, dtype):
    rows = x2d.shape[0]
    itemsize = jnp.dtype(dtype).itemsize
    grid = (_cdiv(rows, block_rows),)  # masked partial last block is fine (elementwise)
    block_bytes = block_rows * cols * itemsize
    vmem_limit = int(4 * block_bytes + _VMEM_HEADROOM)
    return pl.pallas_call(
        _h_sigmoid_kernel,
        out_shape=jax.ShapeDtypeStruct((rows, cols), dtype),
        grid_spec=pltpu.PrefetchScalarGridSpec(
            num_scalar_prefetch=0,
            grid=grid,
            in_specs=[pl.BlockSpec((block_rows, cols), lambda i: (i, 0))],
            out_specs=pl.BlockSpec((block_rows, cols), lambda i: (i, 0)),
        ),
        compiler_params=pltpu.CompilerParams(
            dimension_semantics=("parallel",),
            vmem_limit_bytes=vmem_limit,
        ),
    )(x2d)


def _whole_array_call(x2d, dtype):
    return pl.pallas_call(
        _h_sigmoid_kernel,
        out_shape=jax.ShapeDtypeStruct(x2d.shape, dtype),
    )(x2d)


def h_sigmoid(x):
    """Elementwise hard-sigmoid (relu6(x + 3) / 6) as a Pallas TPU kernel."""
    if not jnp.issubdtype(x.dtype, jnp.floating):
        raise TypeError("h_sigmoid expects a floating-point input "
                        f"(got {x.dtype}); PyTorch hardsigmoid is float-only.")

    orig_shape = x.shape
    dtype = x.dtype
    n = x.size
    if n == 0:
        return x

    itemsize = jnp.dtype(dtype).itemsize
    pack = _sublane_pack(dtype)

    # ---- Small-input path: whole array as a single VMEM block, no grid. ----
    if n * itemsize <= _SMALL_BYTES:
        if n % _LANE == 0:
            out = _whole_array_call(x.reshape(n // _LANE, _LANE), dtype)
            return out.reshape(orig_shape)
        # Ragged tiny input: pad to a multiple of 8*128 so the slab is fully
        # (8,128)-tile dense (never a (1, n) layout), slice after the call.
        n_pad = _cdiv(n, 8 * _LANE) * (8 * _LANE)
        x_flat = jnp.pad(x.reshape(-1), (0, n_pad - n))
        out = _whole_array_call(x_flat.reshape(n_pad // _LANE, _LANE), dtype)
        return out.reshape(-1)[:n].reshape(orig_shape)

    # ---- Main path: lane-dense slab, ~6 MiB blocks, cdiv grid (no padding). ----
    cols = None
    for c in (4096, 2048, 1024, 512, 256, 128):
        if n % c == 0:
            cols = c
            break

    if cols is not None:
        rows = n // cols
        block_rows = _choose_block_rows(rows, cols, itemsize, pack)
        out = _tiled_call(x.reshape(rows, cols), block_rows, cols, dtype)
        return out.reshape(orig_shape)

    # ---- Rare ragged path (n not a multiple of 128): minimal flat pad. ----
    cols = _LANE
    n_pad = _cdiv(n, cols) * cols
    x_flat = jnp.pad(x.reshape(-1), (0, n_pad - n))
    rows = n_pad // cols
    block_rows = _choose_block_rows(rows, cols, itemsize, pack)
    out = _tiled_call(x_flat.reshape(rows, cols), block_rows, cols, dtype)
    return out.reshape(-1)[:n].reshape(orig_shape)


def h_sigmoid_ref(x):
    return jnp.clip(x + 3.0, 0.0, 6.0) / 6.0


if __name__ == "__main__":
    key = jax.random.PRNGKey(0)

    # Small NCHW input, consistent with the PyTorch module's typical usage.
    x = jax.random.normal(key, (2, 4, 16, 16), dtype=jnp.float32) * 4.0
    y = jax.block_until_ready(h_sigmoid(x))
    y_ref = h_sigmoid_ref(x)
    assert y.shape == x.shape and y.dtype == x.dtype
    assert jnp.allclose(y, y_ref, atol=1e-6, rtol=1e-6)

    # Tiled multi-block path (even grid, ~6 MiB blocks, cdiv last-block masking).
    k1, k2 = jax.random.split(key)
    x2 = jax.random.normal(k1, (8, 64, 64, 64), dtype=jnp.float32) * 4.0
    y2 = jax.block_until_ready(h_sigmoid(x2))
    assert jnp.allclose(y2, h_sigmoid_ref(x2), atol=1e-6, rtol=1e-6)

    # Ragged tiny input (n % 128 != 0) exercises the dense small-path padding.
    x3 = jax.random.normal(k2, (3, 5, 7), dtype=jnp.float32) * 4.0
    y3 = jax.block_until_ready(h_sigmoid(x3))
    assert y3.shape == x3.shape
    assert jnp.allclose(y3, h_sigmoid_ref(x3), atol=1e-6, rtol=1e-6)

    print("KERNEL_OK")
</pallas_src>

<mosaic_0001>
module attributes {stable_mosaic.version = 11 : i64} {
  func.func @_h_sigmoid_kernel(%arg0: memref<16x128xf32, #tpu.memory_space<vmem>>, %arg1: memref<16x128xf32, #tpu.memory_space<vmem>>) attributes {dimension_semantics = [], scalar_prefetch = 0 : i64, scratch_operands = 0 : i64, tpu.core_type = #tpu.core_type<tc>} {
    %c0 = arith.constant 0 : index
    %c0_0 = arith.constant 0 : index
    %0 = vector.load %arg0[%c0, %c0_0] : memref<16x128xf32, #tpu.memory_space<vmem>>, vector<16x128xf32>
    %cst = arith.constant 3.000000e+00 : f32
    %1 = vector.broadcast %cst : f32 to vector<16x128xf32>
    %2 = arith.addf %0, %1 : vector<16x128xf32>
    %cst_1 = arith.constant 0.000000e+00 : f32
    %cst_2 = arith.constant 6.000000e+00 : f32
    %3 = vector.broadcast %cst_1 : f32 to vector<16x128xf32>
    %4 = arith.maximumf %3, %2 : vector<16x128xf32>
    %5 = vector.broadcast %cst_2 : f32 to vector<16x128xf32>
    %6 = arith.minimumf %5, %4 : vector<16x128xf32>
    %cst_3 = arith.constant 0.166666672 : f32
    %7 = vector.broadcast %cst_3 : f32 to vector<16x128xf32>
    %8 = arith.mulf %6, %7 : vector<16x128xf32>
    %c0_4 = arith.constant 0 : index
    %c0_5 = arith.constant 0 : index
    %9 = vector.load %arg1[%c0_4, %c0_5] : memref<16x128xf32, #tpu.memory_space<vmem>>, vector<16x128xf32>
    tpu.vector_store %arg1[%c0_4, %c0_5], %8 {strides = array<i32>} : memref<16x128xf32, #tpu.memory_space<vmem>>, vector<16x128xf32>,
    return
  }
}

</mosaic_0001>

<bundles_post_ra>
// kernel: tpu_custom_call.1
= control target key start
LH: loop header
LB: loop body
LE: loop exit
PB: predicated region body
PF: predicated region fallthrough
CT: control target
= control target key end

     0   :  { %6 = vsyncpa [#allocation3], 0  ;;  %s148_s0 = inlined_call_operand.hbm [shape: f32[16,128], index: 0, kind: input, shape index: {}]   ;;  %s149_s1 = inlined_call_operand.hbm [shape: f32[16,128], index: 1, kind: output, shape index: {}]  }
   0x1   :  { %7 = vsyncpa [#allocation4], 0  ;;  %s104_s6 = smov [#allocation2]   ;;  %s56_s10 = scalar_lea.hbm %s148_s0, 256 }
   0x2   :  { %s13_s7 = sshll.u32 %s104_s6, 4  ;;  %p57_p0 = scmp.ne.s32.totalorder %s148_s0, %s56_s10  ;;  %s14_s7 = int_to_ptr.vmem [resolvable:$true] %s13_s7 }
   0x3   :  { %p60_p1 = scmp.lt.u32.totalorder %s56_s10, %s148_s0 }
   0x5   :  { %p62_p2 = pnand %p60_p1, %p57_p0 }
   0x7   :  { %65 = shalt.err (!%p62_p2)
}
   0x8   :  { %s66_s15 = scalar_lea.vmem %s14_s7, 256  ;;  %p71_p4 = scmp.lt.s32.totalorder %s14_s7, %s14_s7 }
   0x9   :  { %p67_p3 = scmp.ne.s32.totalorder %s14_s7, %s66_s15  ;;  %p72_p5 = scmp.lt.s32.totalorder %s66_s15, %s66_s15 }
   0xb   :  { %p73_p6 = por %p72_p5, %p71_p4 }
   0xd   :  { %p74_p7 = pnand %p73_p6, %p67_p3 }
   0xf   :  { %77 = shalt.err (!%p74_p7)
}
  0x10   :  { %s105_s16 = smov 128   ;;  %s106_s17 = smov 8  }
  0x11   :  { %19 = dma.hbm_to_vmem [thread:$0]  %s148_s0, 256, %s14_s7, [#allocation3], %s105_s16, %s105_s16, %s106_s17  }
  0x12   :  { %100 = dma.done.wait [#allocation3], 256  }
  0x13   :  { %101 = vsyncadd [#allocation3], 4294967040  ;;  %v23_v0 = vld [vmem:[#allocation2] sm:$0xff]  ;;  %v24_v1 = vld [vmem:[#allocation2 + $0x8] sm:$0xff]  ;;  %s107_s20 = smov [#allocation5]  }
  0x14   :  { %v25_v2 = vadd.f32 3.0, %v23_v0  ;;  %v26_v3 = vadd.f32 3.0, %v24_v1  ;;  %s40_s21 = sshll.u32 %s107_s20, 4  ;;  %s41_s21 = int_to_ptr.vmem [resolvable:$true] %s40_s21 }
  0x15   :  { %s78_s22 = scalar_lea.vmem %s41_s21, 256  ;;  %p83_p9 = scmp.lt.s32.totalorder %s41_s21, %s41_s21 }
  0x16   :  { %v27_v4 = vmax.f32 %v25_v2, 0.0  ;;  %v28_v5 = vmax.f32 %v26_v3, 0.0  ;;  %p79_p8 = scmp.ne.s32.totalorder %s41_s21, %s78_s22  ;;  %p84_p10 = scmp.lt.s32.totalorder %s78_s22, %s78_s22 }
  0x18   :  { %v29_v6 = vmin.f32 %v27_v4, 6.0  ;;  %v30_v7 = vmin.f32 %v28_v5, 6.0  ;;  %p85_p11 = por %p84_p10, %p83_p9 }
  0x1a   :  { %v31_v8 = vmul.f32 0.16666667, %v29_v6  ;;  %v32_v9 = vmul.f32 0.16666667, %v30_v7  ;;  %p86_p12 = pnand %p85_p11, %p79_p8 }
  0x1c   :  { %33 = vst [vmem:[#allocation5] sm:$0xff] %v31_v8  ;;  %34 = vst [vmem:[#allocation5 + $0x8] sm:$0xff] %v32_v9 }
  0x1d   :  { %89 = shalt.err (!%p86_p12)
}
  0x1e   :  { %s90_s24 = scalar_lea.hbm %s149_s1, 256 }
  0x1f   :  { %p91_p13 = scmp.ne.s32.totalorder %s149_s1, %s90_s24  ;;  %p94_p0 = scmp.lt.u32.totalorder %s90_s24, %s149_s1 }
  0x21   :  { %p96_p1 = pnand %p94_p0, %p91_p13 }
  0x23   :  { %99 = shalt.err (!%p96_p1)
}
  0x24   :  { %46 = dma.vmem_to_hbm [thread:$0]  %s41_s21, 256, %s149_s1, [#allocation4], %s105_s16, %s105_s16, %s106_s17  }
  0x25   :  { %102 = dma.done.wait [#allocation4], 256  }
  0x26   :  { %103 = vsyncadd [#allocation4], 4294967040 }
  0x27   :  { %50 = vsyncpa [#allocation3], 1 }
  0x28   :  { %51 = vsyncpa [#allocation4], 1 }

</bundles_post_ra>
